<compile_context>
chip_gen: v7x
topology: tpu7x:2x2x1
jax: 0.10.0
libtpu: 0.0.40
codegen_flags: <defaults>
</compile_context>

<pallas_src>
import functools
import math

import jax
import jax.numpy as jnp
from jax.experimental import pallas as pl
from jax.experimental.pallas import tpu as pltpu


def _round_up(x, m):
    return (x + m - 1) // m * m


def _nbytes(shape, itemsize):
    return math.prod(shape) * itemsize


def _cparams(block_bytes):
    # 2x for double-buffered tiled operands + 1 MiB headroom; cap at 48 MiB so
    # the same policy is safe on v7x (64 MiB physical VMEM per TC).
    limit = int(min(max(2 * block_bytes + (1 << 20), 4 << 20), 48 << 20))
    return pltpu.CompilerParams(
        dimension_semantics=("parallel",),   # batch tiles independent -> v7x megacore
        vmem_limit_bytes=limit)


# --------------------------------------------------------------------------
# Kernels (one per layer, grid = batch tiles)
# --------------------------------------------------------------------------
def _layer1_kernel(x_ref, w1_ref, h1_ref, stats_ref):
    """h1 = x @ W1 (bias dropped: BN cancels it) + per-tile batch moments."""
    h = jnp.dot(x_ref[...], w1_ref[...], preferred_element_type=jnp.float32)
    h1_ref[...] = h
    # Padded batch rows of x are zero and there is no bias, so they contribute
    # exactly 0 to both moments -> no row mask needed in this pass.
    s = jnp.sum(h, axis=0, keepdims=True)          # (1, H1p)
    q = jnp.sum(h * h, axis=0, keepdims=True)      # (1, H1p)
    row = jax.lax.broadcasted_iota(jnp.int32, (8, h.shape[1]), 0)
    stats_ref[...] = jnp.where(row < 4, s, q)      # rows 0-3: sum, rows 4-7: sumsq


def _layer2_kernel(nrows_ref, h1_ref, sc1_ref, sh1_ref, w2_ref, h2_ref, stats_ref):
    """a1 = relu(BN1(h1)); h2 = a1 @ W2; per-tile batch moments of h2."""
    tb = h1_ref.shape[0]
    a = jnp.maximum(h1_ref[...] * sc1_ref[...] + sh1_ref[...], 0.0)
    # Zero out padded batch rows so they do not pollute layer-2 statistics.
    gid = jax.lax.broadcasted_iota(jnp.int32, (tb, 1), 0) + pl.program_id(0) * tb
    a = jnp.where(gid < nrows_ref[0], a, 0.0)
    h2 = jnp.dot(a.astype(jnp.bfloat16), w2_ref[...],
                 preferred_element_type=jnp.float32)
    h2_ref[...] = h2
    s = jnp.sum(h2, axis=0, keepdims=True)
    q = jnp.sum(h2 * h2, axis=0, keepdims=True)
    row = jax.lax.broadcasted_iota(jnp.int32, (8, h2.shape[1]), 0)
    stats_ref[...] = jnp.where(row < 4, s, q)


def _layer3_kernel(h2_ref, sc2_ref, sh2_ref, w3_ref, b3_ref, o_ref):
    """a2 = relu(BN2(h2)); softmax(a2 @ W3 + b3), b3 pre-padded with -1e30."""
    a = jnp.maximum(h2_ref[...] * sc2_ref[...] + sh2_ref[...], 0.0)
    logits = jnp.dot(a.astype(jnp.bfloat16), w3_ref[...],
                     preferred_element_type=jnp.float32) + b3_ref[...]
    m = jnp.max(logits, axis=1, keepdims=True)
    e = jnp.exp(logits - m)                        # padded classes -> exp(-huge) = 0
    o_ref[...] = e / jnp.sum(e, axis=1, keepdims=True)


# --------------------------------------------------------------------------
# Host-side helpers
# --------------------------------------------------------------------------
def prepare_params(params):
    """Pad / cast parameters ONCE, off the per-call path.

    `params = (w1, b1, g1, be1, w2, b2, g2, be2, w3, b3)` with weights as
    (in, out), i.e. `linear.weight.T` for PyTorch.  b1/b2 are dropped
    (training-mode BatchNorm cancels them exactly); b3 padding is -1e30 so
    padded classes vanish from the softmax.
    """
    w1, _b1, g1, be1, w2, _b2, g2, be2, w3, b3 = params
    H1, H2, C = w1.shape[1], w2.shape[1], w3.shape[1]
    H1p, H2p, Cp = (_round_up(d, 128) for d in (H1, H2, C))

    def pad_mat(w, rp, cp, dtype):
        w = w.astype(dtype)
        return jnp.pad(w, ((0, rp - w.shape[0]), (0, cp - w.shape[1])))

    def pad_vec(v, cp, fill=0.0):
        v = v.astype(jnp.float32).reshape(1, -1)
        return jnp.pad(v, ((0, 0), (0, cp - v.shape[1])), constant_values=fill)

    w1p = pad_mat(w1, w1.shape[0], H1p, jnp.float32)   # keep in_dim unpadded
    w2p = pad_mat(w2, H1p, H2p, jnp.bfloat16)
    w3p = pad_mat(w3, H2p, Cp, jnp.bfloat16)
    g1p, be1p = pad_vec(g1, H1p), pad_vec(be1, H1p)
    g2p, be2p = pad_vec(g2, H2p), pad_vec(be2, H2p)
    b3p = pad_vec(b3, Cp, fill=-1e30)
    return (w1p, g1p, be1p, w2p, g2p, be2p, w3p, b3p)


def _bn_affine(stats, gamma, beta, n, eps):
    """Fold per-tile moments into the BN affine:  y = h * scale + shift."""
    m = stats.reshape(-1, 8, stats.shape[-1])
    s = jnp.sum(m[:, 0, :], axis=0)                  # per-feature batch sum
    q = jnp.sum(m[:, 4, :], axis=0)                  # per-feature sum of squares
    mean = s / n
    var = jnp.maximum(q / n - mean * mean, 0.0)      # biased var; clamp cancellation
    inv = jax.lax.rsqrt(var + eps)
    scale = gamma * inv                              # (1, H)
    shift = beta - mean * scale
    return scale, shift


@functools.partial(jax.jit, static_argnames=("out_dim", "eps", "block_rows"))
def nn_net_forward(x, prep, *, out_dim, eps=1e-5, block_rows=256):
    """nn_Net forward (training-mode BatchNorm) -> softmax probs (B, out_dim)."""
    w1p, g1p, be1p, w2p, g2p, be2p, w3p, b3p = prep
    B, din = x.shape
    H1p, H2p, Cp = w1p.shape[1], w2p.shape[1], w3p.shape[1]

    # Batch tiling: pad rows to a multiple of the tile so every block is full
    # (the layer-1 statistics rely on padded rows being exactly zero).
    tb = min(block_rows, _round_up(B, 8))
    Bp = _round_up(B, tb)
    nt = Bp // tb
    x = x.astype(jnp.float32)
    if Bp != B:
        x = jnp.pad(x, ((0, Bp - B), (0, 0)))
    nrows = jnp.full((1,), B, jnp.int32)             # SMEM scalar: valid batch rows

    f32, bf16 = 4, 2

    # ---- pass 1: h1 = x @ W1 + partial moments -------------------------------
    blk1 = (_nbytes((tb, din), f32) + _nbytes((din, H1p), f32)
            + _nbytes((tb, H1p), f32) + _nbytes((8, H1p), f32))
    h1, st1 = pl.pallas_call(
        _layer1_kernel,
        out_shape=(jax.ShapeDtypeStruct((Bp, H1p), jnp.float32),
                   jax.ShapeDtypeStruct((nt * 8, H1p), jnp.float32)),
        grid=(nt,),
        in_specs=[pl.BlockSpec((tb, din), lambda i: (i, 0)),
                  pl.BlockSpec((din, H1p), lambda i: (0, 0))],
        out_specs=(pl.BlockSpec((tb, H1p), lambda i: (i, 0)),
                   pl.BlockSpec((8, H1p), lambda i: (i, 0))),
        compiler_params=_cparams(blk1),
    )(x, w1p)
    sc1, sh1 = _bn_affine(st1, g1p, be1p, B, eps)    # tiny JAX reduction

    # ---- pass 2: a1 = relu(BN1(h1)); h2 = a1 @ W2 + partial moments ----------
    blk2 = (_nbytes((tb, H1p), f32) + 2 * _nbytes((1, H1p), f32)
            + _nbytes((H1p, H2p), bf16) + _nbytes((tb, H2p), f32)
            + _nbytes((8, H2p), f32))
    h2, st2 = pl.pallas_call(
        _layer2_kernel,
        out_shape=(jax.ShapeDtypeStruct((Bp, H2p), jnp.float32),
                   jax.ShapeDtypeStruct((nt * 8, H2p), jnp.float32)),
        grid_spec=pltpu.PrefetchScalarGridSpec(
            num_scalar_prefetch=1,
            grid=(nt,),
            in_specs=[pl.BlockSpec((tb, H1p), lambda i, n: (i, 0)),
                      pl.BlockSpec((1, H1p), lambda i, n: (0, 0)),
                      pl.BlockSpec((1, H1p), lambda i, n: (0, 0)),
                      pl.BlockSpec((H1p, H2p), lambda i, n: (0, 0))],
            out_specs=(pl.BlockSpec((tb, H2p), lambda i, n: (i, 0)),
                       pl.BlockSpec((8, H2p), lambda i, n: (i, 0)))),
        compiler_params=_cparams(blk2),
    )(nrows, h1, sc1, sh1, w2p)
    sc2, sh2 = _bn_affine(st2, g2p, be2p, B, eps)

    # ---- pass 3: a2 = relu(BN2(h2)); softmax(a2 @ W3 + b3) --------------------
    blk3 = (_nbytes((tb, H2p), f32) + 2 * _nbytes((1, H2p), f32)
            + _nbytes((H2p, Cp), bf16) + _nbytes((1, Cp), f32)
            + _nbytes((tb, Cp), f32))
    out = pl.pallas_call(
        _layer3_kernel,
        out_shape=jax.ShapeDtypeStruct((Bp, Cp), jnp.float32),
        grid=(nt,),
        in_specs=[pl.BlockSpec((tb, H2p), lambda i: (i, 0)),
                  pl.BlockSpec((1, H2p), lambda i: (0, 0)),
                  pl.BlockSpec((1, H2p), lambda i: (0, 0)),
                  pl.BlockSpec((H2p, Cp), lambda i: (0, 0)),
                  pl.BlockSpec((1, Cp), lambda i: (0, 0))],
        out_specs=pl.BlockSpec((tb, Cp), lambda i: (i, 0)),
        compiler_params=_cparams(blk3),
    )(h2, sc2, sh2, w3p, b3p)

    return out[:B, :out_dim]


# --------------------------------------------------------------------------
# Pure-JAX reference (matches PyTorch training-mode forward) + self-test
# --------------------------------------------------------------------------
def _reference(x, params, eps=1e-5):
    w1, b1, g1, be1, w2, b2, g2, be2, w3, b3 = params

    def lin_bn_relu(h, w, b, g, be):
        h = h @ w + b
        mean = h.mean(0)
        var = ((h - mean) ** 2).mean(0)              # biased variance
        h = (h - mean) * jax.lax.rsqrt(var + eps) * g + be
        return jnp.maximum(h, 0.0)

    h = lin_bn_relu(x, w1, b1, g1, be1)
    h = lin_bn_relu(h, w2, b2, g2, be2)
    return jax.nn.softmax(h @ w3 + b3, axis=1)


if __name__ == "__main__":
    B, in_dim, n_hidden_1, n_hidden_2, out_dim = 6, 16, 32, 64, 10

    key = jax.random.PRNGKey(0)
    ks = jax.random.split(key, 11)
    x = jax.random.normal(ks[0], (B, in_dim), jnp.float32)
    w1 = 0.1 * jax.random.normal(ks[1], (in_dim, n_hidden_1), jnp.float32)
    b1 = 0.1 * jax.random.normal(ks[2], (n_hidden_1,), jnp.float32)
    g1 = 1.0 + 0.1 * jax.random.normal(ks[3], (n_hidden_1,), jnp.float32)
    be1 = 0.1 * jax.random.normal(ks[4], (n_hidden_1,), jnp.float32)
    w2 = 0.1 * jax.random.normal(ks[5], (n_hidden_1, n_hidden_2), jnp.float32)
    b2 = 0.1 * jax.random.normal(ks[6], (n_hidden_2,), jnp.float32)
    g2 = 1.0 + 0.1 * jax.random.normal(ks[7], (n_hidden_2,), jnp.float32)
    be2 = 0.1 * jax.random.normal(ks[8], (n_hidden_2,), jnp.float32)
    w3 = 0.1 * jax.random.normal(ks[9], (n_hidden_2, out_dim), jnp.float32)
    b3 = 0.1 * jax.random.normal(ks[10], (out_dim,), jnp.float32)

    params = (w1, b1, g1, be1, w2, b2, g2, be2, w3, b3)

    prep = prepare_params(params)                    # one-time pad/cast (off hot path)
    out = jax.block_until_ready(nn_net_forward(x, prep, out_dim=out_dim))
    ref = _reference(x, params)

    assert out.shape == (B, out_dim), out.shape
    err = float(jnp.max(jnp.abs(out - ref)))
    assert err < 2e-2, f"max abs err vs reference: {err}"
    print("KERNEL_OK")
</pallas_src>

<mosaic_0001>
module attributes {stable_mosaic.version = 11 : i64} {
  func.func @_layer1_kernel(%arg0: i32, %arg1: memref<8x16xf32, #tpu.memory_space<vmem>>, %arg2: memref<16x128xf32, #tpu.memory_space<vmem>>, %arg3: memref<8x128xf32, #tpu.memory_space<vmem>>, %arg4: memref<8x128xf32, #tpu.memory_space<vmem>>) attributes {dimension_semantics = [#tpu.dimension_semantics<parallel>], iteration_bounds = array<i64: 1>, scalar_prefetch = 0 : i64, scratch_operands = 0 : i64, tpu.core_type = #tpu.core_type<tc>, window_params = [{transform_indices = @transform_0, window_bounds = array<i64: 8, 16>}, {pipeline_mode = #tpu.pipeline_mode<synchronous>, transform_indices = @transform_1, window_bounds = array<i64: 16, 128>}, {transform_indices = @transform_2, window_bounds = array<i64: 8, 128>}, {transform_indices = @transform_3, window_bounds = array<i64: 8, 128>}]} {
    %c0 = arith.constant 0 : index
    %c0_0 = arith.constant 0 : index
    %0 = vector.load %arg1[%c0, %c0_0] : memref<8x16xf32, #tpu.memory_space<vmem>>, vector<8x16xf32>
    %c0_1 = arith.constant 0 : index
    %c0_2 = arith.constant 0 : index
    %1 = vector.load %arg2[%c0_1, %c0_2] : memref<16x128xf32, #tpu.memory_space<vmem>>, vector<16x128xf32>
    %cst = arith.constant dense<0.000000e+00> : vector<8x128xf32>
    %2 = tpu.matmul %0, %1, %cst {dimension_numbers = #tpu.dot_dimension_numbers<[1], [0], [0], [1], [0, 0, 1, 1], [], []>} : vector<8x16xf32>, vector<16x128xf32>, vector<8x128xf32> -> vector<8x128xf32>
    %c0_3 = arith.constant 0 : index
    %c0_4 = arith.constant 0 : index
    %3 = vector.load %arg3[%c0_3, %c0_4] : memref<8x128xf32, #tpu.memory_space<vmem>>, vector<8x128xf32>
    tpu.vector_store %arg3[%c0_3, %c0_4], %2 {strides = array<i32>} : memref<8x128xf32, #tpu.memory_space<vmem>>, vector<8x128xf32>,
    %cst_5 = arith.constant dense<0.000000e+00> : vector<128xf32>
    %4 = vector.multi_reduction <add>, %2, %cst_5 [0] : vector<8x128xf32> to vector<128xf32>
    %5 = vector.shape_cast %4 : vector<128xf32> to vector<1x128xf32>
    %6 = arith.mulf %2, %2 : vector<8x128xf32>
    %cst_6 = arith.constant dense<0.000000e+00> : vector<128xf32>
    %7 = vector.multi_reduction <add>, %6, %cst_6 [0] : vector<8x128xf32> to vector<128xf32>
    %8 = vector.shape_cast %7 : vector<128xf32> to vector<1x128xf32>
    %9 = tpu.iota {dimensions = array<i32: 0>} : vector<8x128xi32>
    %c4_i32 = arith.constant 4 : i32
    %10 = vector.broadcast %c4_i32 : i32 to vector<8x128xi32>
    %11 = arith.cmpi slt, %9, %10 : vector<8x128xi32>
    %12 = vector.shape_cast %5 : vector<1x128xf32> to vector<1x128xf32>
    %13 = vector.broadcast %12 : vector<1x128xf32> to vector<8x128xf32>
    %14 = vector.shape_cast %8 : vector<1x128xf32> to vector<1x128xf32>
    %15 = vector.broadcast %14 : vector<1x128xf32> to vector<8x128xf32>
    %16 = arith.select %11, %13, %15 : vector<8x128xi1>, vector<8x128xf32>
    %c0_7 = arith.constant 0 : index
    %c0_8 = arith.constant 0 : index
    %17 = vector.load %arg4[%c0_7, %c0_8] : memref<8x128xf32, #tpu.memory_space<vmem>>, vector<8x128xf32>
    tpu.vector_store %arg4[%c0_7, %c0_8], %16 {strides = array<i32>} : memref<8x128xf32, #tpu.memory_space<vmem>>, vector<8x128xf32>,
    return
  }
  func.func @transform_0(%arg0: i32) -> (i32, i32) {
    %c0_i32 = arith.constant 0 : i32
    %c0_i32_0 = arith.constant 0 : i32
    return %arg0, %c0_i32 : i32, i32
  }
  func.func @transform_1(%arg0: i32) -> (i32, i32) {
    %c0_i32 = arith.constant 0 : i32
    %c0_i32_0 = arith.constant 0 : i32
    %c0_i32_1 = arith.constant 0 : i32
    return %c0_i32, %c0_i32_0 : i32, i32
  }
  func.func @transform_2(%arg0: i32) -> (i32, i32) {
    %c0_i32 = arith.constant 0 : i32
    %c0_i32_0 = arith.constant 0 : i32
    return %arg0, %c0_i32 : i32, i32
  }
  func.func @transform_3(%arg0: i32) -> (i32, i32) {
    %c0_i32 = arith.constant 0 : i32
    %c0_i32_0 = arith.constant 0 : i32
    return %arg0, %c0_i32 : i32, i32
  }
}

module attributes {stable_mosaic.version = 11 : i64} {
  func.func @_layer2_kernel(%arg0: i32, %arg1: memref<1xi32, #tpu.memory_space<smem>>, %arg2: memref<8x128xf32, #tpu.memory_space<vmem>>, %arg3: memref<1x128xf32, #tpu.memory_space<vmem>>, %arg4: memref<1x128xf32, #tpu.memory_space<vmem>>, %arg5: memref<128x128xbf16, #tpu.memory_space<vmem>>, %arg6: memref<8x128xf32, #tpu.memory_space<vmem>>, %arg7: memref<8x128xf32, #tpu.memory_space<vmem>>) attributes {dimension_semantics = [#tpu.dimension_semantics<parallel>], iteration_bounds = array<i64: 1>, scalar_prefetch = 1 : i64, scratch_operands = 0 : i64, tpu.core_type = #tpu.core_type<tc>, window_params = [{transform_indices = @transform_0, window_bounds = array<i64: 8, 128>}, {pipeline_mode = #tpu.pipeline_mode<synchronous>, transform_indices = @transform_1, window_bounds = array<i64: 1, 128>}, {pipeline_mode = #tpu.pipeline_mode<synchronous>, transform_indices = @transform_2, window_bounds = array<i64: 1, 128>}, {pipeline_mode = #tpu.pipeline_mode<synchronous>, transform_indices = @transform_3, window_bounds = array<i64: 128, 128>}, {transform_indices = @transform_4, window_bounds = array<i64: 8, 128>}, {transform_indices = @transform_5, window_bounds = array<i64: 8, 128>}]} {
    %c0 = arith.constant 0 : index
    %c0_0 = arith.constant 0 : index
    %0 = vector.load %arg2[%c0, %c0_0] : memref<8x128xf32, #tpu.memory_space<vmem>>, vector<8x128xf32>
    %c0_1 = arith.constant 0 : index
    %c0_2 = arith.constant 0 : index
    %1 = vector.load %arg3[%c0_1, %c0_2] : memref<1x128xf32, #tpu.memory_space<vmem>>, vector<1x128xf32>
    %2 = vector.broadcast %1 : vector<1x128xf32> to vector<8x128xf32>
    %3 = arith.mulf %0, %2 : vector<8x128xf32>
    %c0_3 = arith.constant 0 : index
    %c0_4 = arith.constant 0 : index
    %4 = vector.load %arg4[%c0_3, %c0_4] : memref<1x128xf32, #tpu.memory_space<vmem>>, vector<1x128xf32>
    %5 = vector.broadcast %4 : vector<1x128xf32> to vector<8x128xf32>
    %6 = arith.addf %3, %5 : vector<8x128xf32>
    %cst = arith.constant 0.000000e+00 : f32
    %7 = vector.broadcast %cst : f32 to vector<8x128xf32>
    %8 = arith.maximumf %6, %7 : vector<8x128xf32>
    %9 = tpu.iota {dimensions = array<i32: 0>} : vector<8x1xi32>
    %c8_i32 = arith.constant 8 : i32
    %10 = arith.muli %arg0, %c8_i32 : i32
    %11 = vector.broadcast %10 : i32 to vector<8x1xi32>
    %12 = arith.addi %9, %11 : vector<8x1xi32>
    %c0_5 = arith.constant 0 : index
    %13 = memref.load %arg1[%c0_5] : memref<1xi32, #tpu.memory_space<smem>>
    %14 = vector.broadcast %13 : i32 to vector<8x1xi32>
    %15 = arith.cmpi slt, %12, %14 : vector<8x1xi32>
    %cst_6 = arith.constant 0.000000e+00 : f32
    %16 = vector.shape_cast %15 : vector<8x1xi1> to vector<8x1xi1>
    %17 = vector.broadcast %16 : vector<8x1xi1> to vector<8x128xi1>
    %18 = vector.broadcast %cst_6 : f32 to vector<8x128xf32>
    %19 = arith.select %17, %8, %18 : vector<8x128xi1>, vector<8x128xf32>
    %20 = arith.truncf %19 : vector<8x128xf32> to vector<8x128xbf16>
    %c0_7 = arith.constant 0 : index
    %c0_8 = arith.constant 0 : index
    %21 = vector.load %arg5[%c0_7, %c0_8] : memref<128x128xbf16, #tpu.memory_space<vmem>>, vector<128x128xbf16>
    %cst_9 = arith.constant dense<0.000000e+00> : vector<8x128xf32>
    %22 = tpu.matmul %20, %21, %cst_9 {dimension_numbers = #tpu.dot_dimension_numbers<[1], [0], [0], [1], [0, 0, 1, 1], [], []>} : vector<8x128xbf16>, vector<128x128xbf16>, vector<8x128xf32> -> vector<8x128xf32>
    %c0_10 = arith.constant 0 : index
    %c0_11 = arith.constant 0 : index
    %23 = vector.load %arg6[%c0_10, %c0_11] : memref<8x128xf32, #tpu.memory_space<vmem>>, vector<8x128xf32>
    tpu.vector_store %arg6[%c0_10, %c0_11], %22 {strides = array<i32>} : memref<8x128xf32, #tpu.memory_space<vmem>>, vector<8x128xf32>,
    %cst_12 = arith.constant dense<0.000000e+00> : vector<128xf32>
    %24 = vector.multi_reduction <add>, %22, %cst_12 [0] : vector<8x128xf32> to vector<128xf32>
    %25 = vector.shape_cast %24 : vector<128xf32> to vector<1x128xf32>
    %26 = arith.mulf %22, %22 : vector<8x128xf32>
    %cst_13 = arith.constant dense<0.000000e+00> : vector<128xf32>
    %27 = vector.multi_reduction <add>, %26, %cst_13 [0] : vector<8x128xf32> to vector<128xf32>
    %28 = vector.shape_cast %27 : vector<128xf32> to vector<1x128xf32>
    %29 = tpu.iota {dimensions = array<i32: 0>} : vector<8x128xi32>
    %c4_i32 = arith.constant 4 : i32
    %30 = vector.broadcast %c4_i32 : i32 to vector<8x128xi32>
    %31 = arith.cmpi slt, %29, %30 : vector<8x128xi32>
    %32 = vector.shape_cast %25 : vector<1x128xf32> to vector<1x128xf32>
    %33 = vector.broadcast %32 : vector<1x128xf32> to vector<8x128xf32>
    %34 = vector.shape_cast %28 : vector<1x128xf32> to vector<1x128xf32>
    %35 = vector.broadcast %34 : vector<1x128xf32> to vector<8x128xf32>
    %36 = arith.select %31, %33, %35 : vector<8x128xi1>, vector<8x128xf32>
    %c0_14 = arith.constant 0 : index
    %c0_15 = arith.constant 0 : index
    %37 = vector.load %arg7[%c0_14, %c0_15] : memref<8x128xf32, #tpu.memory_space<vmem>>, vector<8x128xf32>
    tpu.vector_store %arg7[%c0_14, %c0_15], %36 {strides = array<i32>} : memref<8x128xf32, #tpu.memory_space<vmem>>, vector<8x128xf32>,
    return
  }
  func.func @transform_0(%arg0: i32, %arg1: memref<1xi32, #tpu.memory_space<smem>>) -> (i32, i32) {
    %c0_i32 = arith.constant 0 : i32
    %c0_i32_0 = arith.constant 0 : i32
    return %arg0, %c0_i32 : i32, i32
  }
  func.func @transform_1(%arg0: i32, %arg1: memref<1xi32, #tpu.memory_space<smem>>) -> (i32, i32) {
    %c0_i32 = arith.constant 0 : i32
    %c0_i32_0 = arith.constant 0 : i32
    %c0_i32_1 = arith.constant 0 : i32
    return %c0_i32, %c0_i32_0 : i32, i32
  }
  func.func @transform_2(%arg0: i32, %arg1: memref<1xi32, #tpu.memory_space<smem>>) -> (i32, i32) {
    %c0_i32 = arith.constant 0 : i32
    %c0_i32_0 = arith.constant 0 : i32
    %c0_i32_1 = arith.constant 0 : i32
    return %c0_i32, %c0_i32_0 : i32, i32
  }
  func.func @transform_3(%arg0: i32, %arg1: memref<1xi32, #tpu.memory_space<smem>>) -> (i32, i32) {
    %c0_i32 = arith.constant 0 : i32
    %c0_i32_0 = arith.constant 0 : i32
    %c0_i32_1 = arith.constant 0 : i32
    return %c0_i32, %c0_i32_0 : i32, i32
  }
  func.func @transform_4(%arg0: i32, %arg1: memref<1xi32, #tpu.memory_space<smem>>) -> (i32, i32) {
    %c0_i32 = arith.constant 0 : i32
    %c0_i32_0 = arith.constant 0 : i32
    return %arg0, %c0_i32 : i32, i32
  }
  func.func @transform_5(%arg0: i32, %arg1: memref<1xi32, #tpu.memory_space<smem>>) -> (i32, i32) {
    %c0_i32 = arith.constant 0 : i32
    %c0_i32_0 = arith.constant 0 : i32
    return %arg0, %c0_i32 : i32, i32
  }
}

module attributes {stable_mosaic.version = 11 : i64} {
  func.func @_layer3_kernel(%arg0: i32, %arg1: memref<8x128xf32, #tpu.memory_space<vmem>>, %arg2: memref<1x128xf32, #tpu.memory_space<vmem>>, %arg3: memref<1x128xf32, #tpu.memory_space<vmem>>, %arg4: memref<128x128xbf16, #tpu.memory_space<vmem>>, %arg5: memref<1x128xf32, #tpu.memory_space<vmem>>, %arg6: memref<8x128xf32, #tpu.memory_space<vmem>>) attributes {dimension_semantics = [#tpu.dimension_semantics<parallel>], iteration_bounds = array<i64: 1>, scalar_prefetch = 0 : i64, scratch_operands = 0 : i64, tpu.core_type = #tpu.core_type<tc>, window_params = [{transform_indices = @transform_0, window_bounds = array<i64: 8, 128>}, {pipeline_mode = #tpu.pipeline_mode<synchronous>, transform_indices = @transform_1, window_bounds = array<i64: 1, 128>}, {pipeline_mode = #tpu.pipeline_mode<synchronous>, transform_indices = @transform_2, window_bounds = array<i64: 1, 128>}, {pipeline_mode = #tpu.pipeline_mode<synchronous>, transform_indices = @transform_3, window_bounds = array<i64: 128, 128>}, {pipeline_mode = #tpu.pipeline_mode<synchronous>, transform_indices = @transform_4, window_bounds = array<i64: 1, 128>}, {transform_indices = @transform_5, window_bounds = array<i64: 8, 128>}]} {
    %c0 = arith.constant 0 : index
    %c0_0 = arith.constant 0 : index
    %0 = vector.load %arg1[%c0, %c0_0] : memref<8x128xf32, #tpu.memory_space<vmem>>, vector<8x128xf32>
    %c0_1 = arith.constant 0 : index
    %c0_2 = arith.constant 0 : index
    %1 = vector.load %arg2[%c0_1, %c0_2] : memref<1x128xf32, #tpu.memory_space<vmem>>, vector<1x128xf32>
    %2 = vector.broadcast %1 : vector<1x128xf32> to vector<8x128xf32>
    %3 = arith.mulf %0, %2 : vector<8x128xf32>
    %c0_3 = arith.constant 0 : index
    %c0_4 = arith.constant 0 : index
    %4 = vector.load %arg3[%c0_3, %c0_4] : memref<1x128xf32, #tpu.memory_space<vmem>>, vector<1x128xf32>
    %5 = vector.broadcast %4 : vector<1x128xf32> to vector<8x128xf32>
    %6 = arith.addf %3, %5 : vector<8x128xf32>
    %cst = arith.constant 0.000000e+00 : f32
    %7 = vector.broadcast %cst : f32 to vector<8x128xf32>
    %8 = arith.maximumf %6, %7 : vector<8x128xf32>
    %9 = arith.truncf %8 : vector<8x128xf32> to vector<8x128xbf16>
    %c0_5 = arith.constant 0 : index
    %c0_6 = arith.constant 0 : index
    %10 = vector.load %arg4[%c0_5, %c0_6] : memref<128x128xbf16, #tpu.memory_space<vmem>>, vector<128x128xbf16>
    %cst_7 = arith.constant dense<0.000000e+00> : vector<8x128xf32>
    %11 = tpu.matmul %9, %10, %cst_7 {dimension_numbers = #tpu.dot_dimension_numbers<[1], [0], [0], [1], [0, 0, 1, 1], [], []>} : vector<8x128xbf16>, vector<128x128xbf16>, vector<8x128xf32> -> vector<8x128xf32>
    %c0_8 = arith.constant 0 : index
    %c0_9 = arith.constant 0 : index
    %12 = vector.load %arg5[%c0_8, %c0_9] : memref<1x128xf32, #tpu.memory_space<vmem>>, vector<1x128xf32>
    %13 = vector.broadcast %12 : vector<1x128xf32> to vector<8x128xf32>
    %14 = arith.addf %11, %13 : vector<8x128xf32>
    %cst_10 = arith.constant dense<0xFF800000> : vector<8xf32>
    %15 = vector.multi_reduction <maximumf>, %14, %cst_10 [1] : vector<8x128xf32> to vector<8xf32>
    %16 = vector.shape_cast %15 : vector<8xf32> to vector<8x1xf32>
    %17 = vector.broadcast %16 : vector<8x1xf32> to vector<8x128xf32>
    %18 = arith.subf %14, %17 : vector<8x128xf32>
    %19 = math.exp %18 : vector<8x128xf32>
    %cst_11 = arith.constant dense<0.000000e+00> : vector<8xf32>
    %20 = vector.multi_reduction <add>, %19, %cst_11 [1] : vector<8x128xf32> to vector<8xf32>
    %21 = vector.shape_cast %20 : vector<8xf32> to vector<8x1xf32>
    %22 = vector.broadcast %21 : vector<8x1xf32> to vector<8x128xf32>
    %23 = arith.divf %19, %22 : vector<8x128xf32>
    %c0_12 = arith.constant 0 : index
    %c0_13 = arith.constant 0 : index
    %24 = vector.load %arg6[%c0_12, %c0_13] : memref<8x128xf32, #tpu.memory_space<vmem>>, vector<8x128xf32>
    tpu.vector_store %arg6[%c0_12, %c0_13], %23 {strides = array<i32>} : memref<8x128xf32, #tpu.memory_space<vmem>>, vector<8x128xf32>,
    return
  }
  func.func @transform_0(%arg0: i32) -> (i32, i32) {
    %c0_i32 = arith.constant 0 : i32
    %c0_i32_0 = arith.constant 0 : i32
    return %arg0, %c0_i32 : i32, i32
  }
  func.func @transform_1(%arg0: i32) -> (i32, i32) {
    %c0_i32 = arith.constant 0 : i32
    %c0_i32_0 = arith.constant 0 : i32
    %c0_i32_1 = arith.constant 0 : i32
    return %c0_i32, %c0_i32_0 : i32, i32
  }
  func.func @transform_2(%arg0: i32) -> (i32, i32) {
    %c0_i32 = arith.constant 0 : i32
    %c0_i32_0 = arith.constant 0 : i32
    %c0_i32_1 = arith.constant 0 : i32
    return %c0_i32, %c0_i32_0 : i32, i32
  }
  func.func @transform_3(%arg0: i32) -> (i32, i32) {
    %c0_i32 = arith.constant 0 : i32
    %c0_i32_0 = arith.constant 0 : i32
    %c0_i32_1 = arith.constant 0 : i32
    return %c0_i32, %c0_i32_0 : i32, i32
  }
  func.func @transform_4(%arg0: i32) -> (i32, i32) {
    %c0_i32 = arith.constant 0 : i32
    %c0_i32_0 = arith.constant 0 : i32
    %c0_i32_1 = arith.constant 0 : i32
    return %c0_i32, %c0_i32_0 : i32, i32
  }
  func.func @transform_5(%arg0: i32) -> (i32, i32) {
    %c0_i32 = arith.constant 0 : i32
    %c0_i32_0 = arith.constant 0 : i32
    return %arg0, %c0_i32 : i32, i32
  }
}

</mosaic_0001>

<bundles_post_ra>
// kernel: nn_net_forward.3
= control target key start
LH: loop header
LB: loop body
LE: loop exit
PB: predicated region body
PF: predicated region fallthrough
CT: control target
= control target key end

     0   :  { %9 = vsyncpa [#allocation3], 0  ;;  %s176_s12 = smov [#allocation2]   ;;  %s223_s0 = inlined_call_operand.vmem [shape: f32[8,16], index: 0, kind: input, shape index: {}]   ;;  %s224_s1 = inlined_call_operand.hbm [shape: f32[16,128], index: 1, kind: input, shape index: {}]   ;;  %s225_s2 = inlined_call_operand.vmem [shape: f32[8,128], index: 2, kind: output, shape index: {0}]   ;;  %s226_s3 = inlined_call_operand.vmem [shape: f32[8,128], index: 3, kind: output, shape index: {1}]  }
   0x1   :  { %s17_s13 = sshll.u32 %s176_s12, 4  ;;  %s152_s16 = scalar_lea.hbm %s224_s1, 256  ;;  %s18_s13 = int_to_ptr.vmem [resolvable:$true] %s17_s13 }
   0x2   :  { %p153_p0 = scmp.ne.s32.totalorder %s224_s1, %s152_s16  ;;  %p156_p1 = scmp.lt.u32.totalorder %s152_s16, %s224_s1 }
   0x4   :  { %p158_p2 = pnand %p156_p1, %p153_p0 }
   0x6   :  { %161 = shalt.err (!%p158_p2)
}
   0x7   :  { %s162_s21 = scalar_lea.vmem %s18_s13, 256  ;;  %p167_p4 = scmp.lt.s32.totalorder %s18_s13, %s18_s13 }
   0x8   :  { %p163_p3 = scmp.ne.s32.totalorder %s18_s13, %s162_s21  ;;  %p168_p5 = scmp.lt.s32.totalorder %s162_s21, %s162_s21 }
   0xa   :  { %p169_p6 = por %p168_p5, %p167_p4 }
   0xc   :  { %p170_p7 = pnand %p169_p6, %p163_p3 }
   0xe   :  { %173 = shalt.err (!%p170_p7)
}
   0xf   :  { %s177_s22 = smov 128   ;;  %s178_s23 = smov 8  }
  0x10   :  { %23 = dma.hbm_to_vmem [thread:$0]  %s224_s1, 256, %s18_s13, [#allocation3], %s177_s22, %s177_s22, %s178_s23  }
  0x11   :  { %174 = dma.done.wait [#allocation3], 256  }
  0x12   :  { %175 = vsyncadd [#allocation3], 4294967040  ;;  %v179_v0 = vmov 0.0|0.0   ;;  %vm180_vm0 = vmmov 0   ;;  %v181_v1 = vmov 0.0   ;;  %v28_v2 = vld [vmem:[#allocation2] sm:$0xff]  ;;  %v118_v12 = vlaneseq }
  0x13   :  { %143 = vmatprep.subr.bf16.mxu0 %v179_v0  ;;  %140 = vmatprep.mubr.msk.f32.mxu0 %vm180_vm0, %v181_v1  ;;  %v29_v3 = vld [vmem:[#allocation2 + $0x8] sm:$0xff]  ;;  %v27_v5 = vld [vmem:[%s223_s0] sm:$0xff]  ;;  %vm30_vm1 = vcmask 130048  }
  0x14   :  { %v144_v4 = vpack.c.bf16 %v29_v3, %v28_v2  ;;  %v119_v17 = vshrl.u32 %v118_v12, 7 }
  0x16   :  { %145 = vmatpush3.bf16.msra.mxu0 %v144_v4  ;;  %vm120_vm2 = vcmp.lt.s32.totalorder %v119_v17, 4 }
  0x19   :  { %141 = vmatmul.mubr.msk.f32.vlgmr.msra.gmra.mrb[0].mxu0 %vm30_vm1, %v27_v5 }
  0xec   :  { %v100_v6 = vpop.f32.mrb[0].mxu0 }
  0xed   :  { %104 = vst [vmem:[%s225_s2] sm:$0xff] %v100_v6  ;;  %v105_v7 = vrot.slane %v100_v6, 4  ;;  %v111_v8 = vmul.f32 %v100_v6, %v100_v6  ;;  %v142_v9 = vpop.f32.mrb[1].mxu0 }
  0xef   :  { %v106_v10 = vadd.f32 %v105_v7, %v100_v6  ;;  %v112_v11 = vrot.slane %v111_v8, 4 }
  0xf1   :  { %v107_v13 = vrot.slane %v106_v10, 2  ;;  %v113_v14 = vadd.f32 %v112_v11, %v111_v8 }
  0xf3   :  { %v108_v15 = vadd.f32 %v107_v13, %v106_v10  ;;  %v114_v16 = vrot.slane %v113_v14, 2 }
  0xf5   :  { %v109_v18 = vrot.slane %v108_v15, 1  ;;  %v115_v19 = vadd.f32 %v114_v16, %v113_v14 }
  0xf7   :  { %v116_v20 = vrot.slane %v115_v19, 1  ;;  %v110_v21 = vadd.f32 %v109_v18, %v108_v15 }
  0xf9   :  { %v117_v22 = vadd.f32 %v116_v20, %v115_v19 }
  0xfb   :  { %v121_v23 = vsel %vm120_vm2, %v110_v21, %v117_v22 }
  0xfc   :  { %122 = vst [vmem:[%s226_s3] sm:$0xff] %v121_v23 }
  0xfd   :  { %131 = vsyncpa [#allocation3], 1 }

// kernel: nn_net_forward.4
= control target key start
LH: loop header
LB: loop body
LE: loop exit
PB: predicated region body
PF: predicated region fallthrough
CT: control target
= control target key end

     0   :  { %v233_v0 = vmov 0.0   ;;  %vm234_vm0 = vmmov 0   ;;  %v40_v11 = vlaneseq  ;;  %s312_s4 = inlined_call_operand.vmem [shape: bf16[128,128], index: 4, kind: input, shape index: {}]   ;;  %s313_s1 = inlined_call_operand.vmem [shape: f32[8,128], index: 1, kind: input, shape index: {}]   ;;  %s314_s2 = inlined_call_operand.vmem [shape: f32[1,128], index: 2, kind: input, shape index: {}]   ;;  %s315_s3 = inlined_call_operand.vmem [shape: f32[1,128], index: 3, kind: input, shape index: {}]   ;;  %s316_s0 = inlined_call_operand.<no memory space> [shape: s32[1], index: 0, kind: input, shape index: {}]   ;;  %s317_s5 = inlined_call_operand.vmem [shape: f32[8,128], index: 5, kind: output, shape index: {0}]   ;;  %s318_s6 = inlined_call_operand.vmem [shape: f32[8,128], index: 6, kind: output, shape index: {1}]  }
   0x1   :  { %203 = vmatprep.subr.bf16.mxu0 %v233_v0  ;;  %v225_v1 = vld [vmem:[%s312_s4] sm:$0xff]   ;;  %219 = vmatprep.mubr.msk.bf16.mxu0 %vm234_vm0, %v233_v0  ;;  %v226_v2 = vld [vmem:[%s312_s4 + $0x8] sm:$0xff]   ;;  %v227_v3 = vld [vmem:[%s312_s4 + $0x10] sm:$0xff]   ;;  %v46_v15 = vstv %s316_s0 }
   0x2   :  { %204 = vmatpush3.bf16.msra.mxu0 %v225_v1  ;;  %v228_v4 = vld [vmem:[%s312_s4 + $0x18] sm:$0xff]   ;;  %v229_v5 = vld [vmem:[%s312_s4 + $0x20] sm:$0xff]   ;;  %v230_v9 = vld [vmem:[%s312_s4 + $0x28] sm:$0xff]   ;;  %v41_v14 = vshrl.u32 %v40_v11, 7 }
   0x3   :  { %205 = vmatprep.subr.bf16.mxu0 %v233_v0  ;;  %v22_v6 = vld [vmem:[%s313_s1] sm:$0xff]  ;;  %v231_v13 = vld [vmem:[%s312_s4 + $0x30] sm:$0xff]   ;;  %v232_v17 = vld [vmem:[%s312_s4 + $0x38] sm:$0xff]  }
   0x4   :  { %v181_v7 = vld [vmem:[%s314_s2] ss:$0 sm:$0xff]  ;;  %vm47_vm1 = vcmp.lt.s32.totalorder %v41_v14, %v46_v15  ;;  %vm170_vm3 = vcmp.lt.s32.totalorder %v41_v14, 4 }
   0x5   :  { %v30_v8 = vmul.f32 %v181_v7, %v22_v6  ;;  %v182_v10 = vld [vmem:[%s315_s3] ss:$0 sm:$0xff]  ;;  %vm191_vm2 = vmpackc.low %vm47_vm1, %vm47_vm1 }
   0x6   :  { %206 = vmatpush3.bf16.msra.mxu0 %v226_v2 }
   0x7   :  { %207 = vmatprep.subr.bf16.mxu0 %v233_v0  ;;  %v38_v12 = vadd.f32 %v182_v10, %v30_v8 }
   0x9   :  { %v39_v16 = vmax.f32 %v38_v12, 0.0 }
   0xa   :  { %208 = vmatpush3.bf16.msra.mxu0 %v227_v3 }
   0xb   :  { %209 = vmatprep.subr.bf16.mxu0 %v233_v0  ;;  %v192_v18 = vpack.c.bf16 %v39_v16, %v39_v16 }
   0xe   :  { %210 = vmatpush3.bf16.msra.mxu0 %v228_v4 }
   0xf   :  { %211 = vmatprep.subr.bf16.mxu0 %v233_v0 }
  0x12   :  { %212 = vmatpush3.bf16.msra.mxu0 %v229_v5 }
  0x13   :  { %213 = vmatprep.subr.bf16.mxu0 %v233_v0 }
  0x16   :  { %214 = vmatpush3.bf16.msra.mxu0 %v230_v9 }
  0x17   :  { %215 = vmatprep.subr.bf16.mxu0 %v233_v0 }
  0x1a   :  { %216 = vmatpush3.bf16.msra.mxu0 %v231_v13 }
  0x1b   :  { %217 = vmatprep.subr.bf16.mxu0 %v233_v0 }
  0x1e   :  { %218 = vmatpush3.bf16.msra.mxu0 %v232_v17 }
  0x21   :  { %220 = vmatmul.mubr.msk.bf16.vlgmr.msra.gmra.mrb[0].mxu0 %vm191_vm2, %v192_v18 }
  0xf4   :  { %v150_v19 = vpop.f32.mrb[0].mxu0 }
  0xf5   :  { %156 = vst [vmem:[%s317_s5] sm:$0xff] %v150_v19  ;;  %v157_v20 = vrot.slane %v150_v19, 4  ;;  %v163_v21 = vmul.f32 %v150_v19, %v150_v19  ;;  %v221_v22 = vpop.f32.mrb[1].mxu0 }
  0xf6   :  { %v153_v23 = vpop.f32.mrb[2].mxu0 }
  0xf7   :  { %v158_v24 = vadd.f32 %v157_v20, %v150_v19  ;;  %v164_v25 = vrot.slane %v163_v21, 4  ;;  %v222_v26 = vpop.f32.mrb[3].mxu0 }
  0xf9   :  { %v159_v27 = vrot.slane %v158_v24, 2  ;;  %v165_v28 = vadd.f32 %v164_v25, %v163_v21 }
  0xfb   :  { %v160_v29 = vadd.f32 %v159_v27, %v158_v24  ;;  %v166_v30 = vrot.slane %v165_v28, 2 }
  0xfd   :  { %v161_v31 = vrot.slane %v160_v29, 1  ;;  %v167_v32 = vadd.f32 %v166_v30, %v165_v28 }
  0xff   :  { %v168_v33 = vrot.slane %v167_v32, 1  ;;  %v162_v34 = vadd.f32 %v161_v31, %v160_v29 }
 0x101   :  { %v169_v35 = vadd.f32 %v168_v33, %v167_v32 }
 0x103   :  { %v171_v36 = vsel %vm170_vm3, %v162_v34, %v169_v35 }
 0x104   :  { %172 = vst [vmem:[%s318_s6] sm:$0xff] %v171_v36 }

// kernel: nn_net_forward.5
= control target key start
LH: loop header
LB: loop body
LE: loop exit
PB: predicated region body
PF: predicated region fallthrough
CT: control target
= control target key end

     0   :  { %v255_v1 = vmov 0.0   ;;  %vm256_vm0 = vmmov 0   ;;  %s336_s0 = inlined_call_operand.vmem [shape: f32[8,128], index: 0, kind: input, shape index: {}]   ;;  %s337_s1 = inlined_call_operand.vmem [shape: f32[1,128], index: 1, kind: input, shape index: {}]   ;;  %s338_s2 = inlined_call_operand.vmem [shape: f32[1,128], index: 2, kind: input, shape index: {}]   ;;  %s339_s3 = inlined_call_operand.vmem [shape: bf16[128,128], index: 3, kind: input, shape index: {}]   ;;  %s340_s4 = inlined_call_operand.vmem [shape: f32[1,128], index: 4, kind: input, shape index: {}]   ;;  %s341_s5 = inlined_call_operand.hbm [shape: f32[8,128], index: 5, kind: output, shape index: {}]  }
   0x1   :  { %v219_v0 = vld [vmem:[%s339_s3] sm:$0xff]   ;;  %196 = vmatprep.subr.bf16.mxu0 %v255_v1  ;;  %v220_v2 = vld [vmem:[%s339_s3 + $0x8] sm:$0xff]   ;;  %212 = vmatprep.mubr.msk.bf16.mxu0 %vm256_vm0, %v255_v1  ;;  %v221_v3 = vld [vmem:[%s339_s3 + $0x10] sm:$0xff]  }
   0x2   :  { %197 = vmatpush3.bf16.msra.mxu0 %v219_v0 }
   0x3   :  { %198 = vmatprep.subr.bf16.mxu0 %v255_v1 }
   0x6   :  { %199 = vmatpush3.bf16.msra.mxu0 %v220_v2 }
   0x7   :  { %200 = vmatprep.subr.bf16.mxu0 %v255_v1 }
   0x8   :  { %10 = vsyncpa [#allocation3], 0  ;;  %v222_v4 = vld [vmem:[%s339_s3 + $0x18] sm:$0xff]   ;;  %v223_v5 = vld [vmem:[%s339_s3 + $0x20] sm:$0xff]  }
   0x9   :  { %v22_v6 = vld [vmem:[%s336_s0] sm:$0xff]  ;;  %v224_v9 = vld [vmem:[%s339_s3 + $0x28] sm:$0xff]   ;;  %v225_v12 = vld [vmem:[%s339_s3 + $0x30] sm:$0xff]  }
   0xa   :  { %201 = vmatpush3.bf16.msra.mxu0 %v221_v3  ;;  %v176_v7 = vld [vmem:[%s337_s1] ss:$0 sm:$0xff]  ;;  %v226_v14 = vld [vmem:[%s339_s3 + $0x38] sm:$0xff]   ;;  %s257_s3 = smov [#allocation2]  }
   0xb   :  { %202 = vmatprep.subr.bf16.mxu0 %v255_v1  ;;  %v30_v8 = vmul.f32 %v176_v7, %v22_v6  ;;  %v177_v10 = vld [vmem:[%s338_s2] ss:$0 sm:$0xff]  ;;  %s168_s14 = sshll.u32 %s257_s3, 4  ;;  %s169_s14 = int_to_ptr.vmem [resolvable:$true] %s168_s14 }
   0xc   :  { %v178_v16 = vld [vmem:[%s340_s4] ss:$0 sm:$0xff]  ;;  %s231_s4 = scalar_lea.vmem %s169_s14, 128  ;;  %p236_p1 = scmp.lt.s32.totalorder %s169_s14, %s169_s14 }
   0xd   :  { %v38_v11 = vadd.f32 %v177_v10, %v30_v8  ;;  %p232_p0 = scmp.ne.s32.totalorder %s169_s14, %s231_s4  ;;  %p237_p2 = scmp.lt.s32.totalorder %s231_s4, %s231_s4 }
   0xe   :  { %203 = vmatpush3.bf16.msra.mxu0 %v222_v4 }
   0xf   :  { %204 = vmatprep.subr.bf16.mxu0 %v255_v1  ;;  %v39_v13 = vmax.f32 %v38_v11, 0.0  ;;  %p238_p3 = por %p237_p2, %p236_p1 }
  0x11   :  { %v40_v15 = vpack.c.bf16 %v39_v13, %v39_v13  ;;  %p239_p4 = pnand %p238_p3, %p232_p0 }
  0x12   :  { %205 = vmatpush3.bf16.msra.mxu0 %v223_v5 }
  0x13   :  { %206 = vmatprep.subr.bf16.mxu0 %v255_v1 }
  0x16   :  { %207 = vmatpush3.bf16.msra.mxu0 %v224_v9 }
  0x17   :  { %208 = vmatprep.subr.bf16.mxu0 %v255_v1 }
  0x1a   :  { %209 = vmatpush3.bf16.msra.mxu0 %v225_v12 }
  0x1b   :  { %210 = vmatprep.subr.bf16.mxu0 %v255_v1 }
  0x1e   :  { %211 = vmatpush3.bf16.msra.mxu0 %v226_v14 }
  0x21   :  { %213 = vmatmul.mubr.bf16.vlgmr.msra.gmra.mrb[0].mxu0 %v40_v15 }
  0xf4   :  { %v146_v17 = vpop.f32.mrb[0].mxu0 }
  0xf5   :  { %v147_v18 = vadd.f32 %v178_v16, %v146_v17  ;;  %v214_v19 = vpop.f32.mrb[1].mxu0 }
  0xf6   :  { %v149_v20 = vpop.f32.mrb[2].mxu0 }
  0xf7   :  { %152 = vmax.xlane.f32.xlu0 %v147_v18  ;;  %v215_v21 = vpop.f32.mrb[3].mxu0 }
 0x184   :  { %v153_v22 = vpop.xlane.xlu0 %152 }
 0x185   :  { %v154_v23 = vsub.f32 %v147_v18, %v153_v22 }
 0x187   :  { %v155_v24 = vmul.f32 1.442695, %v154_v23 }
 0x189   :  { %227 = vpow2.f32 %v155_v24 }
 0x193   :  { %v228_v25 = vpop.eup %227 }
 0x194   :  { %157 = vadd.xlane.f32.xlu0 %v228_v25 }
 0x221   :  { %v158_v26 = vpop.xlane.xlu0 %157 }
 0x222   :  { %229 = vrcp.f32 %v158_v26 }
 0x22c   :  { %v230_v27 = vpop.eup %229 }
 0x22d   :  { %v160_v28 = vmul.f32 %v230_v27, %v228_v25 }
 0x22f   :  { %161 = vst [vmem:[#allocation2] sm:$0xff] %v160_v28 }
 0x230   :  { %242 = shalt.err (!%p239_p4)
}
 0x231   :  { %s243_s17 = scalar_lea.hbm %s341_s5, 128 }
 0x232   :  { %p244_p5 = scmp.ne.s32.totalorder %s341_s5, %s243_s17  ;;  %p247_p6 = scmp.lt.u32.totalorder %s243_s17, %s341_s5 }
 0x234   :  { %p249_p7 = pnand %p247_p6, %p244_p5 }
 0x236   :  { %252 = shalt.err (!%p249_p7)
}
 0x237   :  { %171 = dma.vmem_to_hbm [thread:$0]  %s169_s14, 128, %s341_s5, [#allocation3]  }
 0x238   :  { %253 = dma.done.wait [#allocation3], 128  }
 0x239   :  { %254 = vsyncadd [#allocation3], 4294967168 }
 0x23a   :  { %175 = vsyncpa [#allocation3], 1 }

</bundles_post_ra>
